<compile_context>
chip_gen: v7x
topology: tpu7x:2x2x1
jax: 0.10.0
libtpu: 0.0.40
codegen_flags: <defaults>
</compile_context>

<pallas_src>
import functools

import jax
import jax.numpy as jnp
from jax.experimental import pallas as pl
from jax.experimental.pallas import tpu as pltpu


# ------------------------------ helpers --------------------------------------

def _round_up(x, m):
    return ((x + m - 1) // m) * m


def _cdiv(a, b):
    return -(-a // b)


def _activation_from_str(name):
    if name is None:
        return None
    name = name.lower()
    if name == "relu":
        return lambda h: jnp.maximum(h, 0.0)
    if name == "tanh":
        return jnp.tanh
    if name == "sigmoid":
        return jax.nn.sigmoid
    raise ValueError(f"unsupported activation '{name}'")


# ------------------------------ kernel ----------------------------------------

def _mlp_kernel(num_layers, act_name, out_act_name, *refs):
    """Fused MLP: ((x @ W0 + b0) -> act -> ...) @ W_last + b_last [-> out_act]."""
    x_ref = refs[0]
    wb_refs = refs[1:1 + 2 * num_layers]
    o_ref = refs[1 + 2 * num_layers]

    act = _activation_from_str(act_name)
    out_act = _activation_from_str(out_act_name)

    h = x_ref[...]
    for li in range(num_layers):
        w = wb_refs[2 * li][...]
        b = wb_refs[2 * li + 1][...]            # f32, broadcasts over the batch tile
        # Single cast at the dot LHS (no separate full-tile astype pass); MXU matmul with
        # f32 accumulation. Mosaic pads the un-padded K (first layer) / N (last layer)
        # internally, so only real bytes ever cross HBM.
        h = jnp.dot(h.astype(w.dtype), w, preferred_element_type=jnp.float32) + b
        if li < num_layers - 1:
            h = act(h)
        elif out_act is not None:
            h = out_act(h)
    o_ref[...] = h.astype(o_ref.dtype)


# ------------------------------ wrapper ----------------------------------------

def osm_encoder_forward(x, weights, biases, *, activation_fn="relu",
                        output_activation_fn=None, tile_b=1024,
                        mxu_dtype=jnp.bfloat16,
                        vmem_budget_bytes=24 << 20,
                        vmem_limit_bytes=32 << 20,
                        min_grid_steps=2):
    """Runs the OSMEncoder MLP on x: [batch, input_dim] -> [batch, output_dim].

    weights[i]: [in_i, out_i] (transposed vs. PyTorch), biases[i]: [1, out_i].
    mxu_dtype: dtype fed to the MXU. Default bfloat16 (recommended for v5e/v6e/v7x
    throughput); accumulation is always f32. Pass jnp.float32 for exact f32 numerics
    matching the PyTorch module.
    min_grid_steps: lower bound on grid steps (>=2 lets v7x shard the batch over both
    TensorCores); only applied when the batch is large enough for >=8 real rows/tile.
    """
    assert len(weights) == len(biases)
    num_layers = len(weights)
    batch, in_dim = x.shape
    out_dim = int(weights[-1].shape[1])

    # ---- feature-dim policy:
    #   input dim  : UNpadded (no HBM pad pass; Mosaic pads K internally)
    #   hidden dims: padded to multiples of 128 (VMEM-resident weights only)
    #   output dim : UNpadded (output DMA stores only real bytes)
    dims = [in_dim] + [int(w.shape[1]) for w in weights]
    padded_dims = list(dims)
    for i in range(1, len(dims) - 1):
        padded_dims[i] = _round_up(dims[i], 128)

    w_dtype = jnp.dtype(mxu_dtype) if mxu_dtype is not None else jnp.dtype(x.dtype)
    wb_args, wb_specs = [], []
    wb_bytes = 0
    for li, (w, b) in enumerate(zip(weights, biases)):
        d_in, d_out = dims[li], dims[li + 1]
        p_in, p_out = padded_dims[li], padded_dims[li + 1]
        w_p = jnp.pad(w, ((0, p_in - d_in), (0, p_out - d_out))).astype(w_dtype)
        b_p = jnp.pad(b, ((0, 0), (0, p_out - d_out))).astype(jnp.float32)
        wb_args.extend([w_p, b_p])
        # Constant block index -> weights/biases stay resident in VMEM across the grid.
        wb_specs.append(pl.BlockSpec(w_p.shape, lambda i: (0, 0)))
        wb_specs.append(pl.BlockSpec(b_p.shape, lambda i: (0, 0)))
        wb_bytes += int(w_p.size) * jnp.dtype(w_p.dtype).itemsize + int(b_p.size) * 4

    # ---- batch tiling: pick n_tiles first, derive eff_tile (multiple of 8), so padding
    #      waste is <8 rows per tile. Cap eff_tile by a VMEM budget that includes the
    #      double-buffered resident weights/biases.
    x_itemsize = jnp.dtype(x.dtype).itemsize
    out_itemsize = jnp.dtype(x.dtype).itemsize
    max_dim = max(padded_dims)
    fixed_vmem = 2 * wb_bytes                       # weights/biases are double-buffered
    per_row = (2 * in_dim * x_itemsize              # double-buffered input tile
               + 2 * out_dim * out_itemsize         # double-buffered output tile
               + 3 * max_dim * 4)                   # live f32 activations (+ cast copy)
    budget = min(vmem_budget_bytes, vmem_limit_bytes - (4 << 20))
    max_rows = max(8, ((budget - fixed_vmem) // max(per_row, 1)) // 8 * 8)
    tile_cap = max(8, min(_round_up(tile_b, 8), max_rows))

    steps_floor = min_grid_steps if batch >= 8 * max(min_grid_steps, 1) else 1
    n_tiles = max(_cdiv(batch, tile_cap), steps_floor, 1)
    eff_tile = min(tile_cap, _round_up(_cdiv(batch, n_tiles), 8))
    padded_batch = n_tiles * eff_tile
    assert padded_batch >= batch

    # Only batch rows are padded (zeros); feature dim is untouched -> no extra copy when
    # the batch already fills the tiles exactly.
    x_p = x if padded_batch == batch else jnp.pad(x, ((0, padded_batch - batch), (0, 0)))

    x_spec = pl.BlockSpec((eff_tile, in_dim), lambda i: (i, 0))
    out_spec = pl.BlockSpec((eff_tile, out_dim), lambda i: (i, 0))

    # ---- advisory cost estimate so XLA schedules this small kernel sensibly.
    flops = 2 * padded_batch * sum(padded_dims[i] * padded_dims[i + 1]
                                   for i in range(num_layers))
    transcendentals = 0
    if activation_fn and activation_fn.lower() in ("tanh", "sigmoid"):
        transcendentals += padded_batch * sum(padded_dims[1:-1])
    if output_activation_fn and output_activation_fn.lower() in ("tanh", "sigmoid"):
        transcendentals += padded_batch * padded_dims[-1]
    bytes_accessed = int(padded_batch * in_dim * x_itemsize
                         + padded_batch * out_dim * out_itemsize
                         + sum(int(a.size) * jnp.dtype(a.dtype).itemsize for a in wb_args))

    kernel = functools.partial(_mlp_kernel, num_layers,
                               activation_fn, output_activation_fn)

    out_padded = pl.pallas_call(
        kernel,
        out_shape=jax.ShapeDtypeStruct((padded_batch, out_dim), x.dtype),
        grid_spec=pltpu.PrefetchScalarGridSpec(
            num_scalar_prefetch=0,
            grid=(n_tiles,),
            in_specs=[x_spec] + wb_specs,
            out_specs=out_spec,
        ),
        compiler_params=pltpu.CompilerParams(
            dimension_semantics=("parallel",),
            vmem_limit_bytes=vmem_limit_bytes),
        cost_estimate=pl.CostEstimate(flops=flops,
                                      transcendentals=transcendentals,
                                      bytes_accessed=bytes_accessed),
    )(x_p, *wb_args)

    return out_padded if padded_batch == batch else out_padded[:batch]


# --------------------------- parameter setup ------------------------------------

def init_osm_encoder_params(key, input_dim, layers_spec, output_dim,
                            dtype=jnp.float32):
    """Deterministic init mirroring nn.Linear's U(-1/sqrt(fan_in), 1/sqrt(fan_in))."""
    dims = [input_dim] + list(layers_spec) + [output_dim]
    weights, biases = [], []
    for i in range(len(dims) - 1):
        fan_in, fan_out = dims[i], dims[i + 1]
        key, kw, kb = jax.random.split(key, 3)
        bound = 1.0 / (fan_in ** 0.5)
        # stored as [in, out] (transposed vs. PyTorch [out, in])
        w = jax.random.uniform(kw, (fan_in, fan_out), dtype, -bound, bound)
        b = jax.random.uniform(kb, (1, fan_out), dtype, -bound, bound)
        weights.append(w)
        biases.append(b)
    return weights, biases


def make_input(batch_dict, osm_tags_indexes, use_counts=True, use_areas=True,
               use_lengths=True, dtype=jnp.float32):
    """JAX glue equivalent of OSMEncoder.make_input (concat selected tag features).

    The kernel accepts any input dtype without an extra cast pass, so producers that
    already emit bf16 can pass dtype=jnp.bfloat16 to halve input HBM traffic.
    """
    parts = []
    if use_counts:
        parts.append(batch_dict["osm_ohecount"][:, osm_tags_indexes])
    if use_areas:
        parts.append(batch_dict["osm_ohearea"][:, osm_tags_indexes])
    if use_lengths:
        parts.append(batch_dict["osm_ohelength"][:, osm_tags_indexes])
    return jnp.concatenate(parts, axis=1).astype(dtype)


# --------------------------------- main -------------------------------------------

if __name__ == "__main__":
    key = jax.random.PRNGKey(0)

    # Small synthetic configuration consistent with the module:
    #   num selected OSM tags = 16, counts+areas+lengths => input_dim = 48
    #   layers_spec = [32] (one hidden layer, ReLU), output_dim = 16
    # TODO(synk): OSMCodeSets tag-name metadata (get_tag_names_for_osmcounts) is
    # host-side bookkeeping with no Pallas equivalent; indexes are supplied directly.
    num_tags = 16
    osm_tags_indexes = jnp.arange(num_tags)
    layers_spec = [32]
    output_dim = 16
    batch = 20          # deliberately not a multiple of 8 to exercise batch-row padding
    input_dim = 3 * num_tags

    key, k1, k2, k3, kp = jax.random.split(key, 5)
    batch_dict = {
        "osm_ohecount": jax.random.randint(k1, (batch, num_tags), 0, 5).astype(jnp.float32),
        "osm_ohearea": jax.random.uniform(k2, (batch, num_tags)),
        "osm_ohelength": jax.random.uniform(k3, (batch, num_tags)),
    }
    x = make_input(batch_dict, osm_tags_indexes)   # [batch, 48], float32

    weights, biases = init_osm_encoder_params(kp, input_dim, layers_spec, output_dim)

    # Pure-JAX f32 reference.
    h = x
    for i, (w, b) in enumerate(zip(weights, biases)):
        h = h @ w + b
        if i < len(weights) - 1:
            h = jnp.maximum(h, 0.0)
    ref = h

    # 1) Default fast path: bf16 MXU inputs, f32 accum, >=2-step parallel batch grid.
    out_fast = osm_encoder_forward(x, weights, biases,
                                   activation_fn="relu",
                                   output_activation_fn=None)
    out_fast = jax.block_until_ready(out_fast)
    assert out_fast.shape == (batch, output_dim)
    assert jnp.allclose(out_fast, ref, atol=7e-2, rtol=7e-2), "bf16 path mismatch"

    # 2) Exact f32 MXU path with a small tile (exercises multi-step grid + row padding).
    out_f32 = osm_encoder_forward(x, weights, biases,
                                  activation_fn="relu",
                                  output_activation_fn=None,
                                  tile_b=8, mxu_dtype=jnp.float32)
    out_f32 = jax.block_until_ready(out_f32)
    assert out_f32.shape == (batch, output_dim)
    assert jnp.allclose(out_f32, ref, atol=1e-5, rtol=1e-5), "f32 path mismatch"

    print("KERNEL_OK")
</pallas_src>

<mosaic_0001>
module attributes {stable_mosaic.version = 11 : i64} {
  func.func @_mlp_kernel(%arg0: i32, %arg1: memref<16x48xf32, #tpu.memory_space<vmem>>, %arg2: memref<48x128xbf16, #tpu.memory_space<vmem>>, %arg3: memref<1x128xf32, #tpu.memory_space<vmem>>, %arg4: memref<128x16xbf16, #tpu.memory_space<vmem>>, %arg5: memref<1x16xf32, #tpu.memory_space<vmem>>, %arg6: memref<16x16xf32, #tpu.memory_space<vmem>>) attributes {dimension_semantics = [#tpu.dimension_semantics<parallel>], iteration_bounds = array<i64: 2>, scalar_prefetch = 0 : i64, scratch_operands = 0 : i64, tpu.core_type = #tpu.core_type<tc>, window_params = [{transform_indices = @transform_0, window_bounds = array<i64: 16, 48>}, {pipeline_mode = #tpu.pipeline_mode<synchronous>, transform_indices = @transform_1, window_bounds = array<i64: 48, 128>}, {pipeline_mode = #tpu.pipeline_mode<synchronous>, transform_indices = @transform_2, window_bounds = array<i64: 1, 128>}, {pipeline_mode = #tpu.pipeline_mode<synchronous>, transform_indices = @transform_3, window_bounds = array<i64: 128, 16>}, {pipeline_mode = #tpu.pipeline_mode<synchronous>, transform_indices = @transform_4, window_bounds = array<i64: 1, 16>}, {transform_indices = @transform_5, window_bounds = array<i64: 16, 16>}]} {
    %c0 = arith.constant 0 : index
    %c0_0 = arith.constant 0 : index
    %0 = vector.load %arg1[%c0, %c0_0] : memref<16x48xf32, #tpu.memory_space<vmem>>, vector<16x48xf32>
    %c0_1 = arith.constant 0 : index
    %c0_2 = arith.constant 0 : index
    %1 = vector.load %arg2[%c0_1, %c0_2] : memref<48x128xbf16, #tpu.memory_space<vmem>>, vector<48x128xbf16>
    %c0_3 = arith.constant 0 : index
    %c0_4 = arith.constant 0 : index
    %2 = vector.load %arg3[%c0_3, %c0_4] : memref<1x128xf32, #tpu.memory_space<vmem>>, vector<1x128xf32>
    %3 = arith.truncf %0 : vector<16x48xf32> to vector<16x48xbf16>
    %cst = arith.constant dense<0.000000e+00> : vector<16x128xf32>
    %4 = tpu.matmul %3, %1, %cst {dimension_numbers = #tpu.dot_dimension_numbers<[1], [0], [0], [1], [0, 0, 1, 1], [], []>} : vector<16x48xbf16>, vector<48x128xbf16>, vector<16x128xf32> -> vector<16x128xf32>
    %5 = vector.broadcast %2 : vector<1x128xf32> to vector<16x128xf32>
    %6 = arith.addf %4, %5 : vector<16x128xf32>
    %cst_5 = arith.constant 0.000000e+00 : f32
    %7 = vector.broadcast %cst_5 : f32 to vector<16x128xf32>
    %8 = arith.maximumf %6, %7 : vector<16x128xf32>
    %c0_6 = arith.constant 0 : index
    %c0_7 = arith.constant 0 : index
    %9 = vector.load %arg4[%c0_6, %c0_7] : memref<128x16xbf16, #tpu.memory_space<vmem>>, vector<128x16xbf16>
    %c0_8 = arith.constant 0 : index
    %c0_9 = arith.constant 0 : index
    %10 = vector.load %arg5[%c0_8, %c0_9] : memref<1x16xf32, #tpu.memory_space<vmem>>, vector<1x16xf32>
    %11 = arith.truncf %8 : vector<16x128xf32> to vector<16x128xbf16>
    %cst_10 = arith.constant dense<0.000000e+00> : vector<16x16xf32>
    %12 = tpu.matmul %11, %9, %cst_10 {dimension_numbers = #tpu.dot_dimension_numbers<[1], [0], [0], [1], [0, 0, 1, 1], [], []>} : vector<16x128xbf16>, vector<128x16xbf16>, vector<16x16xf32> -> vector<16x16xf32>
    %13 = vector.broadcast %10 : vector<1x16xf32> to vector<16x16xf32>
    %14 = arith.addf %12, %13 : vector<16x16xf32>
    %c0_11 = arith.constant 0 : index
    %c0_12 = arith.constant 0 : index
    %15 = vector.load %arg6[%c0_11, %c0_12] : memref<16x16xf32, #tpu.memory_space<vmem>>, vector<16x16xf32>
    tpu.vector_store %arg6[%c0_11, %c0_12], %14 {strides = array<i32>} : memref<16x16xf32, #tpu.memory_space<vmem>>, vector<16x16xf32>,
    return
  }
  func.func @transform_0(%arg0: i32) -> (i32, i32) {
    %c0_i32 = arith.constant 0 : i32
    %c0_i32_0 = arith.constant 0 : i32
    return %arg0, %c0_i32 : i32, i32
  }
  func.func @transform_1(%arg0: i32) -> (i32, i32) {
    %c0_i32 = arith.constant 0 : i32
    %c0_i32_0 = arith.constant 0 : i32
    %c0_i32_1 = arith.constant 0 : i32
    return %c0_i32, %c0_i32_0 : i32, i32
  }
  func.func @transform_2(%arg0: i32) -> (i32, i32) {
    %c0_i32 = arith.constant 0 : i32
    %c0_i32_0 = arith.constant 0 : i32
    %c0_i32_1 = arith.constant 0 : i32
    return %c0_i32, %c0_i32_0 : i32, i32
  }
  func.func @transform_3(%arg0: i32) -> (i32, i32) {
    %c0_i32 = arith.constant 0 : i32
    %c0_i32_0 = arith.constant 0 : i32
    %c0_i32_1 = arith.constant 0 : i32
    return %c0_i32, %c0_i32_0 : i32, i32
  }
  func.func @transform_4(%arg0: i32) -> (i32, i32) {
    %c0_i32 = arith.constant 0 : i32
    %c0_i32_0 = arith.constant 0 : i32
    %c0_i32_1 = arith.constant 0 : i32
    return %c0_i32, %c0_i32_0 : i32, i32
  }
  func.func @transform_5(%arg0: i32) -> (i32, i32) {
    %c0_i32 = arith.constant 0 : i32
    %c0_i32_0 = arith.constant 0 : i32
    return %arg0, %c0_i32 : i32, i32
  }
}

</mosaic_0001>

<bundles_post_ra>
// kernel: tpu_custom_call.1
= control target key start
LH: loop header
LB: loop body
LE: loop exit
PB: predicated region body
PF: predicated region fallthrough
CT: control target
= control target key end

     0   :  { %s611_s18 = smov 0   ;;  %s674_s0 = inlined_call_operand.vmem [shape: f32[32,48], index: 0, kind: input, shape index: {}]   ;;  %s675_s1 = inlined_call_operand.vmem [shape: bf16[48,128], index: 1, kind: input, shape index: {}]   ;;  %s676_s2 = inlined_call_operand.vmem [shape: f32[1,128], index: 2, kind: input, shape index: {}]   ;;  %s677_s3 = inlined_call_operand.vmem [shape: bf16[128,16], index: 3, kind: input, shape index: {}]   ;;  %s678_s4 = inlined_call_operand.vmem [shape: f32[1,16], index: 4, kind: input, shape index: {}]   ;;  %s679_s5 = inlined_call_operand.vmem [shape: f32[32,16], index: 5, kind: output, shape index: {}]  }
   0x1 LB: > { %s482_s19 = sadd.s32 4294967295, %s577_s18   ;;  %p486_p0 = scmp.ge.s32.totalorder %s577_s18, 1  ;;  %s577_s18 = sphi %s611_s18, %s15_s18  }
   0x2   : > { %p188_p1 = scmp.lt.s32.totalorder %s577_s18, 3 }
   0x4   : > { %p189_p2 = pnand %p486_p0, %p188_p1 }
   0x5   : > { %v560_v0 = vld [vmem:[%s675_s1] sm:$0xff] (!%p189_p2)   ;;  %v579_v1 = vmov (!%p189_p2), 0.0   ;;  %v561_v2 = vld [vmem:[%s675_s1 + $0x8] sm:$0xff] (!%p189_p2)   ;;  %vm580_vm0 = vmmov (!%p189_p2), 0   ;;  %s487_s24 = sshll.u32 (!%p189_p2), %s482_s19, 1  ;;  %v562_v4 = vld [vmem:[%s675_s1 + $0x10] sm:$0xff] (!%p189_p2)  }
   0x6   : > { %192 = sbr.rel (%p189_p2) target bundleno = 456 (0x1c8), region = 40  ;;  %520 = vmatprep.subr.bf16.mxu0 (!%p189_p2), %v579_v1  ;;  %530 = vmatprep.subr.bf16.mxu1 (!%p189_p2), %v579_v1  ;;  %p217_p3 = scmp.lt.s32.totalorder (!%p189_p2), %s487_s24, 3  ;;  %v563_v3 = vld [vmem:[%s677_s3] sm:$0xff] (!%p189_p2)   ;;  %v564_v5 = vld [vmem:[%s677_s3 + $0x8] sm:$0xff] (!%p189_p2)   ;;  %vm263_vm1 = vcmask (!%p189_p2), 392192   ;;  %v565_v9 = vld [vmem:[%s677_s3 + $0x10] sm:$0xff] (!%p189_p2)  }
   0x7   : > { %521 = vmatpush3.bf16.msra.mxu0 (!%p189_p2), %v560_v0  ;;  %526 = vmatprep.mubr.msk.bf16.mxu0 (!%p189_p2), %vm580_vm0, %v579_v1  ;;  %v566_v10 = vld [vmem:[%s677_s3 + $0x18] sm:$0xff] (!%p189_p2)   ;;  %v567_v11 = vld [vmem:[%s677_s3 + $0x20] sm:$0xff] (!%p189_p2)   ;;  %v568_v12 = vld [vmem:[%s677_s3 + $0x28] sm:$0xff] (!%p189_p2)   ;;  %vm423_vm2 = vcmask (!%p189_p2), 130048  }
   0x8   : > { %522 = vmatprep.subr.bf16.mxu0 (!%p189_p2), %v579_v1  ;;  %546 = vmatprep.mubr.msk.bf16.mxu1 (!%p189_p2), %vm580_vm0, %v579_v1  ;;  %v569_v13 = vld [vmem:[%s677_s3 + $0x30] sm:$0xff] (!%p189_p2)   ;;  %v570_v14 = vld [vmem:[%s677_s3 + $0x38] sm:$0xff] (!%p189_p2)   ;;  %v491_v15 = vld [vmem:[%s676_s2] ss:$0 sm:$0xff] (!%p189_p2) }
   0x9   : > { %531 = vmatpush3.bf16.msra.mxu1 (!%p189_p2), %v563_v3  ;;  %v496_v25 = vld [vmem:[%s678_s4] ss:$0 sm:$0xff] (!%p189_p2) }
   0xa   : > { %532 = vmatprep.subr.bf16.mxu1 (!%p189_p2), %v579_v1 }
   0xb   : > { %523 = vmatpush3.bf16.msra.mxu0 (!%p189_p2), %v561_v2 }
   0xc   : > { %524 = vmatprep.subr.bf16.mxu0 (!%p189_p2), %v579_v1 }
   0xd   : > { %s681_s24 = smov (!%p217_p3, %s487_s24), 3  ;;  %533 = vmatpush3.bf16.msra.mxu1 %v564_v5 }
   0xe   : > { %s488_s6 = sshll.u32 %s681_s24, 3  ;;  %534 = vmatprep.subr.bf16.mxu1 %v579_v1 }
   0xf   : > { %s220_s9 = scalar_lea.vmem %s674_s0, %s488_s6  ;;  %525 = vmatpush3.bf16.msra.mxu0 %v562_v4  ;;  %s226_s30 = scalar_lea.vmem %s679_s5, %s488_s6 }
  0x10   : > { %v229_v6 = vld [vmem:[%s220_s9] sm:$0xff]  ;;  %v230_v7 = vld [vmem:[%s220_s9 + $0x8] sm:$0xff] }
  0x11   : > { %v238_v8 = vpack.c.bf16 %v230_v7, %v229_v6  ;;  %535 = vmatpush3.bf16.msra.mxu1 %v565_v9 }
  0x12   : > { %536 = vmatprep.subr.bf16.mxu1 %v579_v1 }
  0x13   : > { %527 = vmatmul.mubr.msk.bf16.vlgmr.msra.gmra.mrb[0].mxu0 %vm263_vm1, %v238_v8 }
  0x15   : > { %537 = vmatpush3.bf16.msra.mxu1 %v566_v10 }
  0x16   : > { %538 = vmatprep.subr.bf16.mxu1 %v579_v1 }
  0x19   : > { %539 = vmatpush3.bf16.msra.mxu1 %v567_v11 }
  0x1a   : > { %540 = vmatprep.subr.bf16.mxu1 %v579_v1 }
  0x1d   : > { %541 = vmatpush3.bf16.msra.mxu1 %v568_v12 }
  0x1e   : > { %542 = vmatprep.subr.bf16.mxu1 %v579_v1 }
  0x21   : > { %543 = vmatpush3.bf16.msra.mxu1 %v569_v13 }
  0x22   : > { %544 = vmatprep.subr.bf16.mxu1 %v579_v1 }
  0x25   : > { %545 = vmatpush3.bf16.msra.mxu1 %v570_v14 }
  0xe6   : > { %v301_v16 = vpop.f32.mrb[0].mxu0 }
  0xe7   : > { %v302_v17 = vadd.f32 %v491_v15, %v301_v16  ;;  %v528_v18 = vpop.f32.mrb[1].mxu0 }
  0xe8   : > { %v304_v19 = vpop.f32.mrb[2].mxu0 }
  0xe9   : > { %v305_v20 = vadd.f32 %v491_v15, %v304_v19  ;;  %v529_v21 = vpop.f32.mrb[3].mxu0  ;;  %v308_v22 = vmax.f32 %v302_v17, 0.0 }
  0xeb   : > { %v309_v23 = vmax.f32 %v305_v20, 0.0 }
  0xed   : > { %v327_v24 = vpack.c.bf16 %v309_v23, %v308_v22 }
  0xef   : > { %547 = vmatmul.mubr.bf16.vlgmr.msra.gmra.mrb[0].mxu1 %v327_v24 }
 0x1c2   : > { %v416_v26 = vpop.f32.mrb[0].mxu1 }
 0x1c3   : > { %v417_v27 = vadd.f32 %v496_v25, %v416_v26  ;;  %v548_v28 = vpop.f32.mrb[1].mxu1 }
 0x1c4   : > { %v419_v29 = vpop.f32.mrb[2].mxu1 }
 0x1c5   : > { %424 = vst.msk [vmem:[%s226_s30] sm:$0xff] %vm423_vm2, %v417_v27  ;;  %v420_v30 = vadd.f32 %v496_v25, %v419_v29  ;;  %v549_v31 = vpop.f32.mrb[3].mxu1 }
 0x1c7   : > { %425 = vst.msk [vmem:[%s226_s30 + $0x8] sm:$0xff] %vm423_vm2, %v420_v30 }
 0x1c8 PF: > { %s15_s18 = sadd.s32 1, %s577_s18  }
 0x1c9   : > { %p12_p4 = scmp.ge.s32.totalorder %s15_s18, 4  }
 0x1cb   :  { %14 = sbr.rel (!%p12_p4) target bundleno = 1 (0x1), region = 70 }

</bundles_post_ra>
